<compile_context>
chip_gen: v7x
topology: tpu7x:2x2x1
jax: 0.10.0
libtpu: 0.0.40
codegen_flags: <defaults>
</compile_context>

<pallas_src>
import jax
import jax.numpy as jnp
from jax.experimental import pallas as pl
from jax.experimental.pallas import tpu as pltpu

_LANES = 128      # vreg lane width
_SUBLANES = 8     # vreg sublane count (f32)


def _round_up(x: int, m: int) -> int:
    return ((x + m - 1) // m) * m


def _gating_kernel(params_ref, x_ref, o_ref):
    """params_ref: SMEM (2,) = [alpha, beta]; x_ref/o_ref: VMEM (block_rows, 128)."""
    alpha = params_ref[0]
    beta = params_ref[1]
    x = x_ref[...]                                   # single VMEM load of the tile
    # clamp(alpha * relness - alpha * beta, min=0, max=1)
    o_ref[...] = jnp.clip(alpha * x - alpha * beta, 0.0, 1.0)


def learnable_relatedness_gating(relness, alpha, beta, *, max_block_rows=1024):
    """Pallas implementation of LearnableRelatednessGating.forward.

    relness: any shape / float dtype (data-dependent number of relation pairs).
    alpha, beta: scalar parameters (alpha trainable, beta fixed in the module).
    Returns an array with the same shape/dtype as `relness`.
    """
    orig_shape = relness.shape
    orig_dtype = relness.dtype
    x = relness.reshape(-1).astype(jnp.float32)
    n = x.shape[0]

    # Lane-dense 2-D view: pad to a whole number of (block_rows, 128) tiles.
    rows = max(1, -(-n // _LANES))                               # ceil(n / 128)
    block_rows = min(_round_up(rows, _SUBLANES), max_block_rows)  # multiple of 8
    rows_padded = _round_up(rows, block_rows)
    n_padded = rows_padded * _LANES
    if n_padded != n:
        x = jnp.pad(x, (0, n_padded - n))
    x2 = x.reshape(rows_padded, _LANES)

    params = jnp.array([alpha, beta], dtype=jnp.float32)          # -> SMEM

    grid = (rows_padded // block_rows,)
    out2 = pl.pallas_call(
        _gating_kernel,
        out_shape=jax.ShapeDtypeStruct((rows_padded, _LANES), jnp.float32),
        grid_spec=pltpu.PrefetchScalarGridSpec(
            num_scalar_prefetch=0,
            grid=grid,
            in_specs=[
                # scalar parameters, whole array resident in SMEM
                pl.BlockSpec(memory_space=pltpu.MemorySpace.SMEM),
                # lane-dense relness tile
                pl.BlockSpec((block_rows, _LANES), lambda i: (i, 0)),
            ],
            out_specs=pl.BlockSpec((block_rows, _LANES), lambda i: (i, 0)),
        ),
        compiler_params=pltpu.CompilerParams(
            dimension_semantics=("parallel",)),
    )(params, x2)

    return out2.reshape(-1)[:n].reshape(orig_shape).astype(orig_dtype)


def _reference(relness, alpha, beta):
    return jnp.clip(alpha * relness - alpha * beta, 0.0, 1.0)


if __name__ == "__main__":
    key = jax.random.PRNGKey(0)
    k1, k2 = jax.random.split(key)

    # cfg.MODEL.ROI_RELATION_HEAD.BGNN_MODULE.LEARNABLE_SCALING_WEIGHT = (alpha, beta)
    alpha = jnp.float32(1.3333)
    beta = jnp.float32(0.25)

    # Data-dependent (non tile-aligned) number of relation proposals.
    n_rel = 173
    relness = jax.random.uniform(k1, (n_rel,), dtype=jnp.float32)

    out = learnable_relatedness_gating(relness, alpha, beta)
    jax.block_until_ready(out)
    ref = _reference(relness, alpha, beta)
    assert out.shape == relness.shape and out.dtype == relness.dtype
    assert jnp.allclose(out, ref, atol=1e-6, rtol=1e-6)

    # Also exercise a 2-D relness matrix (e.g. per-pair relatedness map).
    relness2 = jax.random.normal(k2, (6, 40), dtype=jnp.float32)
    out2 = learnable_relatedness_gating(relness2, alpha, beta)
    jax.block_until_ready(out2)
    assert jnp.allclose(out2, _reference(relness2, alpha, beta), atol=1e-6, rtol=1e-6)

    print("KERNEL_OK")
</pallas_src>

<mosaic_0001>
module attributes {stable_mosaic.version = 11 : i64} {
  func.func @_gating_kernel(%arg0: i32, %arg1: memref<2xf32, #tpu.memory_space<smem>>, %arg2: memref<8x128xf32, #tpu.memory_space<vmem>>, %arg3: memref<8x128xf32, #tpu.memory_space<vmem>>) attributes {dimension_semantics = [#tpu.dimension_semantics<parallel>], iteration_bounds = array<i64: 1>, scalar_prefetch = 0 : i64, scratch_operands = 0 : i64, tpu.core_type = #tpu.core_type<tc>, window_params = [{transform_indices = @transform_0, window_bounds = array<i64: 2>}, {transform_indices = @transform_1, window_bounds = array<i64: 8, 128>}, {transform_indices = @transform_2, window_bounds = array<i64: 8, 128>}]} {
    %c0 = arith.constant 0 : index
    %0 = memref.load %arg1[%c0] : memref<2xf32, #tpu.memory_space<smem>>
    %c1 = arith.constant 1 : index
    %1 = memref.load %arg1[%c1] : memref<2xf32, #tpu.memory_space<smem>>
    %c0_0 = arith.constant 0 : index
    %c0_1 = arith.constant 0 : index
    %2 = vector.load %arg2[%c0_0, %c0_1] : memref<8x128xf32, #tpu.memory_space<vmem>>, vector<8x128xf32>
    %3 = vector.broadcast %0 : f32 to vector<8x128xf32>
    %4 = arith.mulf %3, %2 : vector<8x128xf32>
    %5 = arith.mulf %0, %1 : f32
    %6 = vector.broadcast %5 : f32 to vector<8x128xf32>
    %7 = arith.subf %4, %6 : vector<8x128xf32>
    %cst = arith.constant 0.000000e+00 : f32
    %cst_2 = arith.constant 1.000000e+00 : f32
    %8 = vector.broadcast %cst : f32 to vector<8x128xf32>
    %9 = arith.maximumf %8, %7 : vector<8x128xf32>
    %10 = vector.broadcast %cst_2 : f32 to vector<8x128xf32>
    %11 = arith.minimumf %10, %9 : vector<8x128xf32>
    %c0_3 = arith.constant 0 : index
    %c0_4 = arith.constant 0 : index
    %12 = vector.load %arg3[%c0_3, %c0_4] : memref<8x128xf32, #tpu.memory_space<vmem>>, vector<8x128xf32>
    tpu.vector_store %arg3[%c0_3, %c0_4], %11 {strides = array<i32>} : memref<8x128xf32, #tpu.memory_space<vmem>>, vector<8x128xf32>,
    return
  }
  func.func @transform_0(%arg0: i32) -> i32 {
    %c0_i32 = arith.constant 0 : i32
    %c0_i32_0 = arith.constant 0 : i32
    return %c0_i32 : i32
  }
  func.func @transform_1(%arg0: i32) -> (i32, i32) {
    %c0_i32 = arith.constant 0 : i32
    %c0_i32_0 = arith.constant 0 : i32
    return %arg0, %c0_i32 : i32, i32
  }
  func.func @transform_2(%arg0: i32) -> (i32, i32) {
    %c0_i32 = arith.constant 0 : i32
    %c0_i32_0 = arith.constant 0 : i32
    return %arg0, %c0_i32 : i32, i32
  }
}

</mosaic_0001>

<bundles_post_ra>
// kernel: tpu_custom_call.1
= control target key start
LH: loop header
LB: loop body
LE: loop exit
PB: predicated region body
PF: predicated region fallthrough
CT: control target
= control target key end

     0   :  { %7 = vsyncpa [#allocation5], 0  ;;  %s180_s0 = inlined_call_operand.hbm [shape: f32[2], index: 0, kind: input, shape index: {}]   ;;  %s181_s1 = inlined_call_operand.hbm [shape: f32[8,128], index: 1, kind: input, shape index: {}]   ;;  %s182_s2 = inlined_call_operand.hbm [shape: f32[8,128], index: 2, kind: output, shape index: {}]  }
   0x1   :  { %8 = vsyncpa [#allocation3], 0 }
   0x2   :  { %9 = vsyncpa [#allocation4], 0  ;;  %s66_s11 = scalar_lea.hbm %s180_s0, 16 }
   0x3   :  { %p67_p0 = scmp.ne.s32.totalorder %s180_s0, %s66_s11  ;;  %p70_p1 = scmp.lt.u32.totalorder %s66_s11, %s180_s0 }
   0x5   :  { %p72_p2 = pnand %p70_p1, %p67_p0 }
   0x7   :  { %75 = shalt.err (!%p72_p2)
}
   0x8   :  { %s126_s16 = smov [#allocation2]   ;;  %s127_s19 = smov [#allocation6]  }
   0x9   :  { %17 = dma.hbm_to_smem %s180_s0, 16, %s126_s16, [#allocation5]  }
   0xa   :  { %s24_s20 = sshll.u32 %s127_s19, 4  ;;  %s76_s23 = scalar_lea.hbm %s181_s1, 128  ;;  %s25_s20 = int_to_ptr.vmem [resolvable:$true] %s24_s20 }
   0xb   :  { %p77_p3 = scmp.ne.s32.totalorder %s181_s1, %s76_s23  ;;  %p80_p4 = scmp.lt.u32.totalorder %s76_s23, %s181_s1 }
   0xd   :  { %p82_p5 = pnand %p80_p4, %p77_p3 }
   0xf   :  { %85 = shalt.err (!%p82_p5)
}
  0x10   :  { %s86_s28 = scalar_lea.vmem %s25_s20, 128  ;;  %p91_p7 = scmp.lt.s32.totalorder %s25_s20, %s25_s20 }
  0x11   :  { %p87_p6 = scmp.ne.s32.totalorder %s25_s20, %s86_s28  ;;  %p92_p8 = scmp.lt.s32.totalorder %s86_s28, %s86_s28 }
  0x13   :  { %p93_p9 = por %p92_p8, %p91_p7 }
  0x15   :  { %p94_p10 = pnand %p93_p9, %p87_p6 }
  0x17   :  { %97 = shalt.err (!%p94_p10)
}
  0x18   :  { %27 = dma.hbm_to_vmem [thread:$0]  %s181_s1, 128, %s25_s20, [#allocation3]  }
  0x19   :  { %120 = dma.done.wait [#allocation5], 16  }
  0x1a   :  { %121 = vsyncadd [#allocation5], 4294967280 }
  0x1b   :  { %122 = dma.done.wait [#allocation3], 128  }
  0x1c   :  { %123 = vsyncadd [#allocation3], 4294967168 }
  0x1d   :  { %34 = sfence }
  0x1e   :  { %s35_s30 = sld [smem:[#allocation2]]  ;;  %s62_s3 = sld [smem:[#allocation2 + $0x1]]  ;;  %v37_v0 = vld [vmem:[#allocation6] sm:$0xff] }
  0x1f   :  { %s128_s5 = smov [#allocation7]  }
  0x20   :  { %s52_s6 = sshll.u32 %s128_s5, 4  ;;  %s53_s6 = int_to_ptr.vmem [resolvable:$true] %s52_s6 }
  0x21   :  { %s98_s1 = scalar_lea.vmem %s53_s6, 128  ;;  %p103_p12 = scmp.lt.s32.totalorder %s53_s6, %s53_s6 }
  0x22   :  { %p99_p11 = scmp.ne.s32.totalorder %s53_s6, %s98_s1  ;;  %p104_p13 = scmp.lt.s32.totalorder %s98_s1, %s98_s1 }
  0x24   :  { %v38_v1 = vstv %s35_s30  ;;  %s40_s4 = smul.f32 %s62_s3, %s35_s30  ;;  %p105_p0 = por %p104_p13, %p103_p12 }
  0x25   :  { %v39_v2 = vmul.f32 %v38_v1, %v37_v0 }
  0x26   :  { %v41_v3 = vstv %s40_s4  ;;  %p106_p1 = pnand %p105_p0, %p99_p11 }
  0x27   :  { %v42_v4 = vsub.f32 %v39_v2, %v41_v3 }
  0x29   :  { %v43_v5 = vmax.f32 %v42_v4, 0.0 }
  0x2b   :  { %v44_v6 = vmin.f32 %v43_v5, 1.0 }
  0x2d   :  { %45 = vst [vmem:[#allocation7] sm:$0xff] %v44_v6 }
  0x2e   :  { %109 = shalt.err (!%p106_p1)
}
  0x2f   :  { %s110_s9 = scalar_lea.hbm %s182_s2, 128 }
  0x30   :  { %p111_p2 = scmp.ne.s32.totalorder %s182_s2, %s110_s9  ;;  %p114_p3 = scmp.lt.u32.totalorder %s110_s9, %s182_s2 }
  0x32   :  { %p116_p4 = pnand %p114_p3, %p111_p2 }
  0x34   :  { %119 = shalt.err (!%p116_p4)
}
  0x35   :  { %55 = dma.vmem_to_hbm [thread:$0]  %s53_s6, 128, %s182_s2, [#allocation4]  }
  0x36   :  { %124 = dma.done.wait [#allocation4], 128  }
  0x37   :  { %125 = vsyncadd [#allocation4], 4294967168 }
  0x38   :  { %59 = vsyncpa [#allocation3], 1 }
  0x39   :  { %60 = vsyncpa [#allocation4], 1 }
  0x3a   :  { %61 = vsyncpa [#allocation5], 1 }

</bundles_post_ra>
